<compile_context>
chip_gen: v7x
topology: tpu7x:2x2x1
jax: 0.10.0
libtpu: 0.0.40
codegen_flags: <defaults>
</compile_context>

<pallas_src>
import functools

import jax
import jax.numpy as jnp
from jax.experimental import pallas as pl
from jax.experimental.pallas import tpu as pltpu


def _leaky_relu(x, slope=0.2):
    # For 0 < slope < 1, leaky_relu(x) == max(x, slope * x).
    return jnp.maximum(x, slope * x)


def _dense_slabs(w_ref, b_ref, xs):
    """y_o = sum_i w[o, i] * xs[i] + b[o] for every output row o.

    w_ref: SMEM ref [out, in], b_ref: SMEM ref [out], xs: list of `in` slabs of
    shape [S, TL].  Weights/biases are read as SMEM scalars so Mosaic emits
    scalar-splat mul/adds over fully occupied vregs -- no broadcast materialization.
    """
    out_dim, in_dim = w_ref.shape
    ys = []
    for o in range(out_dim):                    # static unroll: 10 / 5 / 2 rows
        acc = xs[0] * w_ref[o, 0]
        for i in range(1, in_dim):              # static unroll: 2 / 10 / 5 terms
            acc = acc + xs[i] * w_ref[o, i]
        ys.append(acc + b_ref[o])
    return ys


def discriminator_kernel(x_ref, w1_ref, b1_ref, w2_ref, b2_ref, w3_ref, b3_ref,
                         o_ref):
    # x_ref: [in_dim, S, TL] (VMEM);  o_ref: [out_dim, S, TL] (VMEM);
    # w*/b* refs: whole arrays resident in SMEM, indexed as scalars.
    x = [x_ref[i] for i in range(x_ref.shape[0])]
    # Layer 1: Linear(2 -> 10) + LeakyReLU(0.2); Dropout(0.2) = identity (eval mode).
    h = [_leaky_relu(v) for v in _dense_slabs(w1_ref, b1_ref, x)]
    # Layer 2: Linear(10 -> 5) + LeakyReLU(0.2); Dropout = identity (eval mode).
    h = [_leaky_relu(v) for v in _dense_slabs(w2_ref, b2_ref, h)]
    # Output layer: Linear(5 -> 2).
    y = _dense_slabs(w3_ref, b3_ref, h)
    for q, v in enumerate(y):                   # lane-dense, unmasked stores
        o_ref[q] = v.astype(o_ref.dtype)


def _round_up(n, m):
    return ((n + m - 1) // m) * m


def _sublane_pack(batch):
    # Largest of 8/4/2/1 dividing the batch: how many batch sub-groups we fold
    # into the sublane axis (8 -> fully occupied vregs). No padding ever needed.
    for s in (8, 4, 2, 1):
        if batch % s == 0:
            return s


@functools.partial(jax.jit, static_argnames=("tile_lanes",))
def discriminator_forward_fm(x_fm, params, tile_lanes=4096):
    """Fast path: feature-major x_fm [in_dim, B] -> [out_dim, B]. Zero layout ops."""
    in_dim, batch = x_fm.shape
    out_dim = params["w3"].shape[0]

    s = _sublane_pack(batch)                    # batch -> (sublane, lane) packing
    bs = batch // s
    if bs <= 128:
        tl = bs                                 # full extent (always legal)
    else:
        tl = _round_up(max(tile_lanes, 128), 128)       # lane dim multiple of 128
        # Aim for >= 2 grid steps when possible so both v7x TensorCores get work.
        tl = min(tl, max(128, _round_up(pl.cdiv(bs, 2), 128)))
    grid = (pl.cdiv(bs, tl),)                   # boundary block clipped by Pallas

    x3 = x_fm.reshape(in_dim, s, bs)            # free: splits the trailing dim only

    smem = pl.BlockSpec(memory_space=pltpu.MemorySpace.SMEM)
    out3 = pl.pallas_call(
        discriminator_kernel,
        out_shape=jax.ShapeDtypeStruct((out_dim, s, bs), jnp.float32),
        grid=grid,
        in_specs=[
            # x tile marches along the batch/lane axis -> pipelined DMA.
            pl.BlockSpec((in_dim, s, tl), lambda i: (0, 0, i)),
            # Weights / biases: whole arrays resident in SMEM (scalar reads).
            smem, smem, smem, smem, smem, smem,
        ],
        out_specs=pl.BlockSpec((out_dim, s, tl), lambda i: (0, 0, i)),
        compiler_params=pltpu.CompilerParams(
            dimension_semantics=("parallel",),
            vmem_limit_bytes=32 * 1024 * 1024,   # covers v5e's smaller default
        ),
    )(x3, params["w1"], params["b1"], params["w2"], params["b2"],
      params["w3"], params["b3"])
    return out3.reshape(out_dim, batch)


def discriminator_forward(x, params, tile_lanes=4096):
    """PyTorch-layout wrapper: x [B, in_dim] -> [B, 2].

    The two thin transposes here are the only ops besides the kernel; callers that
    can keep activations feature-major should use discriminator_forward_fm.
    """
    return discriminator_forward_fm(x.T, params, tile_lanes=tile_lanes).T


def init_params(key, input_dim=2, hidden_sizes=(10, 5), out_dim=2):
    """nn.Linear-style init; W [out, in] (torch-native), b [out] (1-D, SMEM-friendly)."""
    dims = [input_dim, *hidden_sizes, out_dim]
    params = {}
    for i, (fan_in, fan_out) in enumerate(zip(dims[:-1], dims[1:]), start=1):
        key, kw, kb = jax.random.split(key, 3)
        bound = 1.0 / (fan_in ** 0.5)
        params[f"w{i}"] = jax.random.uniform(
            kw, (fan_out, fan_in), jnp.float32, minval=-bound, maxval=bound)
        params[f"b{i}"] = jax.random.uniform(
            kb, (fan_out,), jnp.float32, minval=-bound, maxval=bound)
    return params


def _reference(x, params):
    # Pure-JAX reference (eval-mode dropout == identity), torch-native layouts.
    h = x @ params["w1"].T + params["b1"]
    h = jnp.where(h > 0, h, 0.2 * h)
    h = h @ params["w2"].T + params["b2"]
    h = jnp.where(h > 0, h, 0.2 * h)
    return h @ params["w3"].T + params["b3"]


if __name__ == "__main__":
    key = jax.random.PRNGKey(0)
    k1, k2, k3, kp = jax.random.split(key, 4)

    params = init_params(kp, input_dim=2, hidden_sizes=(10, 5), out_dim=2)

    # Small case consistent with the module (PyTorch layout [B, input_dim]).
    x = jax.random.normal(k1, (8, 2), jnp.float32)
    out = discriminator_forward(x, params)
    jax.block_until_ready(out)
    assert out.shape == (8, 2)
    assert jnp.allclose(out, _reference(x, params), atol=1e-4, rtol=1e-5)

    # Multi-step grid + boundary clipping: B/8 = 129 lanes -> 2 steps of 128,
    # last step clipped to 1 valid lane (no explicit padding anywhere).
    x2 = jax.random.normal(k2, (1032, 2), jnp.float32)
    out2 = discriminator_forward(x2, params)
    jax.block_until_ready(out2)
    assert out2.shape == (1032, 2)
    assert jnp.allclose(out2, _reference(x2, params), atol=1e-4, rtol=1e-5)

    # Feature-major fast path (no transposes at all) + odd batch (pack fallback S=1).
    x3_fm = jax.random.normal(k3, (2, 13), jnp.float32)
    out3_fm = discriminator_forward_fm(x3_fm, params)
    jax.block_until_ready(out3_fm)
    assert out3_fm.shape == (2, 13)
    assert jnp.allclose(out3_fm.T, _reference(x3_fm.T, params), atol=1e-4, rtol=1e-5)

    print("KERNEL_OK")
</pallas_src>

<mosaic_0001>
module attributes {stable_mosaic.version = 11 : i64} {
  func.func @discriminator_kernel(%arg0: i32, %arg1: memref<2x8x1xf32, #tpu.memory_space<vmem>>, %arg2: memref<10x2xf32, #tpu.memory_space<smem>>, %arg3: memref<10xf32, #tpu.memory_space<smem>>, %arg4: memref<5x10xf32, #tpu.memory_space<smem>>, %arg5: memref<5xf32, #tpu.memory_space<smem>>, %arg6: memref<2x5xf32, #tpu.memory_space<smem>>, %arg7: memref<2xf32, #tpu.memory_space<smem>>, %arg8: memref<2x8x1xf32, #tpu.memory_space<vmem>>) attributes {dimension_semantics = [#tpu.dimension_semantics<parallel>], iteration_bounds = array<i64: 1>, scalar_prefetch = 0 : i64, scratch_operands = 0 : i64, tpu.core_type = #tpu.core_type<tc>, window_params = [{transform_indices = @transform_0, window_bounds = array<i64: 2, 8, 1>}, {transform_indices = @transform_1, window_bounds = array<i64: 10, 2>}, {transform_indices = @transform_2, window_bounds = array<i64: 10>}, {transform_indices = @transform_3, window_bounds = array<i64: 5, 10>}, {transform_indices = @transform_4, window_bounds = array<i64: 5>}, {transform_indices = @transform_5, window_bounds = array<i64: 2, 5>}, {transform_indices = @transform_6, window_bounds = array<i64: 2>}, {transform_indices = @transform_7, window_bounds = array<i64: 2, 8, 1>}]} {
    %c0 = arith.constant 0 : index
    %c0_0 = arith.constant 0 : index
    %c0_1 = arith.constant 0 : index
    %0 = vector.load %arg1[%c0, %c0_0, %c0_1] : memref<2x8x1xf32, #tpu.memory_space<vmem>>, vector<1x8x1xf32>
    %1 = vector.shape_cast %0 : vector<1x8x1xf32> to vector<8x1xf32>
    %c1 = arith.constant 1 : index
    %c0_2 = arith.constant 0 : index
    %c0_3 = arith.constant 0 : index
    %2 = vector.load %arg1[%c1, %c0_2, %c0_3] : memref<2x8x1xf32, #tpu.memory_space<vmem>>, vector<1x8x1xf32>
    %3 = vector.shape_cast %2 : vector<1x8x1xf32> to vector<8x1xf32>
    %c0_4 = arith.constant 0 : index
    %c0_5 = arith.constant 0 : index
    %4 = memref.load %arg2[%c0_4, %c0_5] : memref<10x2xf32, #tpu.memory_space<smem>>
    %5 = vector.broadcast %4 : f32 to vector<8x1xf32>
    %6 = arith.mulf %1, %5 : vector<8x1xf32>
    %c0_6 = arith.constant 0 : index
    %c1_7 = arith.constant 1 : index
    %7 = memref.load %arg2[%c0_6, %c1_7] : memref<10x2xf32, #tpu.memory_space<smem>>
    %8 = vector.broadcast %7 : f32 to vector<8x1xf32>
    %9 = arith.mulf %3, %8 : vector<8x1xf32>
    %10 = arith.addf %6, %9 : vector<8x1xf32>
    %c0_8 = arith.constant 0 : index
    %11 = memref.load %arg3[%c0_8] : memref<10xf32, #tpu.memory_space<smem>>
    %12 = vector.broadcast %11 : f32 to vector<8x1xf32>
    %13 = arith.addf %10, %12 : vector<8x1xf32>
    %c1_9 = arith.constant 1 : index
    %c0_10 = arith.constant 0 : index
    %14 = memref.load %arg2[%c1_9, %c0_10] : memref<10x2xf32, #tpu.memory_space<smem>>
    %15 = vector.broadcast %14 : f32 to vector<8x1xf32>
    %16 = arith.mulf %1, %15 : vector<8x1xf32>
    %c1_11 = arith.constant 1 : index
    %c1_12 = arith.constant 1 : index
    %17 = memref.load %arg2[%c1_11, %c1_12] : memref<10x2xf32, #tpu.memory_space<smem>>
    %18 = vector.broadcast %17 : f32 to vector<8x1xf32>
    %19 = arith.mulf %3, %18 : vector<8x1xf32>
    %20 = arith.addf %16, %19 : vector<8x1xf32>
    %c1_13 = arith.constant 1 : index
    %21 = memref.load %arg3[%c1_13] : memref<10xf32, #tpu.memory_space<smem>>
    %22 = vector.broadcast %21 : f32 to vector<8x1xf32>
    %23 = arith.addf %20, %22 : vector<8x1xf32>
    %c2 = arith.constant 2 : index
    %c0_14 = arith.constant 0 : index
    %24 = memref.load %arg2[%c2, %c0_14] : memref<10x2xf32, #tpu.memory_space<smem>>
    %25 = vector.broadcast %24 : f32 to vector<8x1xf32>
    %26 = arith.mulf %1, %25 : vector<8x1xf32>
    %c2_15 = arith.constant 2 : index
    %c1_16 = arith.constant 1 : index
    %27 = memref.load %arg2[%c2_15, %c1_16] : memref<10x2xf32, #tpu.memory_space<smem>>
    %28 = vector.broadcast %27 : f32 to vector<8x1xf32>
    %29 = arith.mulf %3, %28 : vector<8x1xf32>
    %30 = arith.addf %26, %29 : vector<8x1xf32>
    %c2_17 = arith.constant 2 : index
    %31 = memref.load %arg3[%c2_17] : memref<10xf32, #tpu.memory_space<smem>>
    %32 = vector.broadcast %31 : f32 to vector<8x1xf32>
    %33 = arith.addf %30, %32 : vector<8x1xf32>
    %c3 = arith.constant 3 : index
    %c0_18 = arith.constant 0 : index
    %34 = memref.load %arg2[%c3, %c0_18] : memref<10x2xf32, #tpu.memory_space<smem>>
    %35 = vector.broadcast %34 : f32 to vector<8x1xf32>
    %36 = arith.mulf %1, %35 : vector<8x1xf32>
    %c3_19 = arith.constant 3 : index
    %c1_20 = arith.constant 1 : index
    %37 = memref.load %arg2[%c3_19, %c1_20] : memref<10x2xf32, #tpu.memory_space<smem>>
    %38 = vector.broadcast %37 : f32 to vector<8x1xf32>
    %39 = arith.mulf %3, %38 : vector<8x1xf32>
    %40 = arith.addf %36, %39 : vector<8x1xf32>
    %c3_21 = arith.constant 3 : index
    %41 = memref.load %arg3[%c3_21] : memref<10xf32, #tpu.memory_space<smem>>
    %42 = vector.broadcast %41 : f32 to vector<8x1xf32>
    %43 = arith.addf %40, %42 : vector<8x1xf32>
    %c4 = arith.constant 4 : index
    %c0_22 = arith.constant 0 : index
    %44 = memref.load %arg2[%c4, %c0_22] : memref<10x2xf32, #tpu.memory_space<smem>>
    %45 = vector.broadcast %44 : f32 to vector<8x1xf32>
    %46 = arith.mulf %1, %45 : vector<8x1xf32>
    %c4_23 = arith.constant 4 : index
    %c1_24 = arith.constant 1 : index
    %47 = memref.load %arg2[%c4_23, %c1_24] : memref<10x2xf32, #tpu.memory_space<smem>>
    %48 = vector.broadcast %47 : f32 to vector<8x1xf32>
    %49 = arith.mulf %3, %48 : vector<8x1xf32>
    %50 = arith.addf %46, %49 : vector<8x1xf32>
    %c4_25 = arith.constant 4 : index
    %51 = memref.load %arg3[%c4_25] : memref<10xf32, #tpu.memory_space<smem>>
    %52 = vector.broadcast %51 : f32 to vector<8x1xf32>
    %53 = arith.addf %50, %52 : vector<8x1xf32>
    %c5 = arith.constant 5 : index
    %c0_26 = arith.constant 0 : index
    %54 = memref.load %arg2[%c5, %c0_26] : memref<10x2xf32, #tpu.memory_space<smem>>
    %55 = vector.broadcast %54 : f32 to vector<8x1xf32>
    %56 = arith.mulf %1, %55 : vector<8x1xf32>
    %c5_27 = arith.constant 5 : index
    %c1_28 = arith.constant 1 : index
    %57 = memref.load %arg2[%c5_27, %c1_28] : memref<10x2xf32, #tpu.memory_space<smem>>
    %58 = vector.broadcast %57 : f32 to vector<8x1xf32>
    %59 = arith.mulf %3, %58 : vector<8x1xf32>
    %60 = arith.addf %56, %59 : vector<8x1xf32>
    %c5_29 = arith.constant 5 : index
    %61 = memref.load %arg3[%c5_29] : memref<10xf32, #tpu.memory_space<smem>>
    %62 = vector.broadcast %61 : f32 to vector<8x1xf32>
    %63 = arith.addf %60, %62 : vector<8x1xf32>
    %c6 = arith.constant 6 : index
    %c0_30 = arith.constant 0 : index
    %64 = memref.load %arg2[%c6, %c0_30] : memref<10x2xf32, #tpu.memory_space<smem>>
    %65 = vector.broadcast %64 : f32 to vector<8x1xf32>
    %66 = arith.mulf %1, %65 : vector<8x1xf32>
    %c6_31 = arith.constant 6 : index
    %c1_32 = arith.constant 1 : index
    %67 = memref.load %arg2[%c6_31, %c1_32] : memref<10x2xf32, #tpu.memory_space<smem>>
    %68 = vector.broadcast %67 : f32 to vector<8x1xf32>
    %69 = arith.mulf %3, %68 : vector<8x1xf32>
    %70 = arith.addf %66, %69 : vector<8x1xf32>
    %c6_33 = arith.constant 6 : index
    %71 = memref.load %arg3[%c6_33] : memref<10xf32, #tpu.memory_space<smem>>
    %72 = vector.broadcast %71 : f32 to vector<8x1xf32>
    %73 = arith.addf %70, %72 : vector<8x1xf32>
    %c7 = arith.constant 7 : index
    %c0_34 = arith.constant 0 : index
    %74 = memref.load %arg2[%c7, %c0_34] : memref<10x2xf32, #tpu.memory_space<smem>>
    %75 = vector.broadcast %74 : f32 to vector<8x1xf32>
    %76 = arith.mulf %1, %75 : vector<8x1xf32>
    %c7_35 = arith.constant 7 : index
    %c1_36 = arith.constant 1 : index
    %77 = memref.load %arg2[%c7_35, %c1_36] : memref<10x2xf32, #tpu.memory_space<smem>>
    %78 = vector.broadcast %77 : f32 to vector<8x1xf32>
    %79 = arith.mulf %3, %78 : vector<8x1xf32>
    %80 = arith.addf %76, %79 : vector<8x1xf32>
    %c7_37 = arith.constant 7 : index
    %81 = memref.load %arg3[%c7_37] : memref<10xf32, #tpu.memory_space<smem>>
    %82 = vector.broadcast %81 : f32 to vector<8x1xf32>
    %83 = arith.addf %80, %82 : vector<8x1xf32>
    %c8 = arith.constant 8 : index
    %c0_38 = arith.constant 0 : index
    %84 = memref.load %arg2[%c8, %c0_38] : memref<10x2xf32, #tpu.memory_space<smem>>
    %85 = vector.broadcast %84 : f32 to vector<8x1xf32>
    %86 = arith.mulf %1, %85 : vector<8x1xf32>
    %c8_39 = arith.constant 8 : index
    %c1_40 = arith.constant 1 : index
    %87 = memref.load %arg2[%c8_39, %c1_40] : memref<10x2xf32, #tpu.memory_space<smem>>
    %88 = vector.broadcast %87 : f32 to vector<8x1xf32>
    %89 = arith.mulf %3, %88 : vector<8x1xf32>
    %90 = arith.addf %86, %89 : vector<8x1xf32>
    %c8_41 = arith.constant 8 : index
    %91 = memref.load %arg3[%c8_41] : memref<10xf32, #tpu.memory_space<smem>>
    %92 = vector.broadcast %91 : f32 to vector<8x1xf32>
    %93 = arith.addf %90, %92 : vector<8x1xf32>
    %c9 = arith.constant 9 : index
    %c0_42 = arith.constant 0 : index
    %94 = memref.load %arg2[%c9, %c0_42] : memref<10x2xf32, #tpu.memory_space<smem>>
    %95 = vector.broadcast %94 : f32 to vector<8x1xf32>
    %96 = arith.mulf %1, %95 : vector<8x1xf32>
    %c9_43 = arith.constant 9 : index
    %c1_44 = arith.constant 1 : index
    %97 = memref.load %arg2[%c9_43, %c1_44] : memref<10x2xf32, #tpu.memory_space<smem>>
    %98 = vector.broadcast %97 : f32 to vector<8x1xf32>
    %99 = arith.mulf %3, %98 : vector<8x1xf32>
    %100 = arith.addf %96, %99 : vector<8x1xf32>
    %c9_45 = arith.constant 9 : index
    %101 = memref.load %arg3[%c9_45] : memref<10xf32, #tpu.memory_space<smem>>
    %102 = vector.broadcast %101 : f32 to vector<8x1xf32>
    %103 = arith.addf %100, %102 : vector<8x1xf32>
    %cst = arith.constant 2.000000e-01 : f32
    %104 = vector.broadcast %cst : f32 to vector<8x1xf32>
    %105 = arith.mulf %104, %13 : vector<8x1xf32>
    %106 = arith.maximumf %13, %105 : vector<8x1xf32>
    %cst_46 = arith.constant 2.000000e-01 : f32
    %107 = vector.broadcast %cst_46 : f32 to vector<8x1xf32>
    %108 = arith.mulf %107, %23 : vector<8x1xf32>
    %109 = arith.maximumf %23, %108 : vector<8x1xf32>
    %cst_47 = arith.constant 2.000000e-01 : f32
    %110 = vector.broadcast %cst_47 : f32 to vector<8x1xf32>
    %111 = arith.mulf %110, %33 : vector<8x1xf32>
    %112 = arith.maximumf %33, %111 : vector<8x1xf32>
    %cst_48 = arith.constant 2.000000e-01 : f32
    %113 = vector.broadcast %cst_48 : f32 to vector<8x1xf32>
    %114 = arith.mulf %113, %43 : vector<8x1xf32>
    %115 = arith.maximumf %43, %114 : vector<8x1xf32>
    %cst_49 = arith.constant 2.000000e-01 : f32
    %116 = vector.broadcast %cst_49 : f32 to vector<8x1xf32>
    %117 = arith.mulf %116, %53 : vector<8x1xf32>
    %118 = arith.maximumf %53, %117 : vector<8x1xf32>
    %cst_50 = arith.constant 2.000000e-01 : f32
    %119 = vector.broadcast %cst_50 : f32 to vector<8x1xf32>
    %120 = arith.mulf %119, %63 : vector<8x1xf32>
    %121 = arith.maximumf %63, %120 : vector<8x1xf32>
    %cst_51 = arith.constant 2.000000e-01 : f32
    %122 = vector.broadcast %cst_51 : f32 to vector<8x1xf32>
    %123 = arith.mulf %122, %73 : vector<8x1xf32>
    %124 = arith.maximumf %73, %123 : vector<8x1xf32>
    %cst_52 = arith.constant 2.000000e-01 : f32
    %125 = vector.broadcast %cst_52 : f32 to vector<8x1xf32>
    %126 = arith.mulf %125, %83 : vector<8x1xf32>
    %127 = arith.maximumf %83, %126 : vector<8x1xf32>
    %cst_53 = arith.constant 2.000000e-01 : f32
    %128 = vector.broadcast %cst_53 : f32 to vector<8x1xf32>
    %129 = arith.mulf %128, %93 : vector<8x1xf32>
    %130 = arith.maximumf %93, %129 : vector<8x1xf32>
    %cst_54 = arith.constant 2.000000e-01 : f32
    %131 = vector.broadcast %cst_54 : f32 to vector<8x1xf32>
    %132 = arith.mulf %131, %103 : vector<8x1xf32>
    %133 = arith.maximumf %103, %132 : vector<8x1xf32>
    %c0_55 = arith.constant 0 : index
    %c0_56 = arith.constant 0 : index
    %134 = memref.load %arg4[%c0_55, %c0_56] : memref<5x10xf32, #tpu.memory_space<smem>>
    %135 = vector.broadcast %134 : f32 to vector<8x1xf32>
    %136 = arith.mulf %106, %135 : vector<8x1xf32>
    %c0_57 = arith.constant 0 : index
    %c1_58 = arith.constant 1 : index
    %137 = memref.load %arg4[%c0_57, %c1_58] : memref<5x10xf32, #tpu.memory_space<smem>>
    %138 = vector.broadcast %137 : f32 to vector<8x1xf32>
    %139 = arith.mulf %109, %138 : vector<8x1xf32>
    %140 = arith.addf %136, %139 : vector<8x1xf32>
    %c0_59 = arith.constant 0 : index
    %c2_60 = arith.constant 2 : index
    %141 = memref.load %arg4[%c0_59, %c2_60] : memref<5x10xf32, #tpu.memory_space<smem>>
    %142 = vector.broadcast %141 : f32 to vector<8x1xf32>
    %143 = arith.mulf %112, %142 : vector<8x1xf32>
    %144 = arith.addf %140, %143 : vector<8x1xf32>
    %c0_61 = arith.constant 0 : index
    %c3_62 = arith.constant 3 : index
    %145 = memref.load %arg4[%c0_61, %c3_62] : memref<5x10xf32, #tpu.memory_space<smem>>
    %146 = vector.broadcast %145 : f32 to vector<8x1xf32>
    %147 = arith.mulf %115, %146 : vector<8x1xf32>
    %148 = arith.addf %144, %147 : vector<8x1xf32>
    %c0_63 = arith.constant 0 : index
    %c4_64 = arith.constant 4 : index
    %149 = memref.load %arg4[%c0_63, %c4_64] : memref<5x10xf32, #tpu.memory_space<smem>>
    %150 = vector.broadcast %149 : f32 to vector<8x1xf32>
    %151 = arith.mulf %118, %150 : vector<8x1xf32>
    %152 = arith.addf %148, %151 : vector<8x1xf32>
    %c0_65 = arith.constant 0 : index
    %c5_66 = arith.constant 5 : index
    %153 = memref.load %arg4[%c0_65, %c5_66] : memref<5x10xf32, #tpu.memory_space<smem>>
    %154 = vector.broadcast %153 : f32 to vector<8x1xf32>
    %155 = arith.mulf %121, %154 : vector<8x1xf32>
    %156 = arith.addf %152, %155 : vector<8x1xf32>
    %c0_67 = arith.constant 0 : index
    %c6_68 = arith.constant 6 : index
    %157 = memref.load %arg4[%c0_67, %c6_68] : memref<5x10xf32, #tpu.memory_space<smem>>
    %158 = vector.broadcast %157 : f32 to vector<8x1xf32>
    %159 = arith.mulf %124, %158 : vector<8x1xf32>
    %160 = arith.addf %156, %159 : vector<8x1xf32>
    %c0_69 = arith.constant 0 : index
    %c7_70 = arith.constant 7 : index
    %161 = memref.load %arg4[%c0_69, %c7_70] : memref<5x10xf32, #tpu.memory_space<smem>>
    %162 = vector.broadcast %161 : f32 to vector<8x1xf32>
    %163 = arith.mulf %127, %162 : vector<8x1xf32>
    %164 = arith.addf %160, %163 : vector<8x1xf32>
    %c0_71 = arith.constant 0 : index
    %c8_72 = arith.constant 8 : index
    %165 = memref.load %arg4[%c0_71, %c8_72] : memref<5x10xf32, #tpu.memory_space<smem>>
    %166 = vector.broadcast %165 : f32 to vector<8x1xf32>
    %167 = arith.mulf %130, %166 : vector<8x1xf32>
    %168 = arith.addf %164, %167 : vector<8x1xf32>
    %c0_73 = arith.constant 0 : index
    %c9_74 = arith.constant 9 : index
    %169 = memref.load %arg4[%c0_73, %c9_74] : memref<5x10xf32, #tpu.memory_space<smem>>
    %170 = vector.broadcast %169 : f32 to vector<8x1xf32>
    %171 = arith.mulf %133, %170 : vector<8x1xf32>
    %172 = arith.addf %168, %171 : vector<8x1xf32>
    %c0_75 = arith.constant 0 : index
    %173 = memref.load %arg5[%c0_75] : memref<5xf32, #tpu.memory_space<smem>>
    %174 = vector.broadcast %173 : f32 to vector<8x1xf32>
    %175 = arith.addf %172, %174 : vector<8x1xf32>
    %c1_76 = arith.constant 1 : index
    %c0_77 = arith.constant 0 : index
    %176 = memref.load %arg4[%c1_76, %c0_77] : memref<5x10xf32, #tpu.memory_space<smem>>
    %177 = vector.broadcast %176 : f32 to vector<8x1xf32>
    %178 = arith.mulf %106, %177 : vector<8x1xf32>
    %c1_78 = arith.constant 1 : index
    %c1_79 = arith.constant 1 : index
    %179 = memref.load %arg4[%c1_78, %c1_79] : memref<5x10xf32, #tpu.memory_space<smem>>
    %180 = vector.broadcast %179 : f32 to vector<8x1xf32>
    %181 = arith.mulf %109, %180 : vector<8x1xf32>
    %182 = arith.addf %178, %181 : vector<8x1xf32>
    %c1_80 = arith.constant 1 : index
    %c2_81 = arith.constant 2 : index
    %183 = memref.load %arg4[%c1_80, %c2_81] : memref<5x10xf32, #tpu.memory_space<smem>>
    %184 = vector.broadcast %183 : f32 to vector<8x1xf32>
    %185 = arith.mulf %112, %184 : vector<8x1xf32>
    %186 = arith.addf %182, %185 : vector<8x1xf32>
    %c1_82 = arith.constant 1 : index
    %c3_83 = arith.constant 3 : index
    %187 = memref.load %arg4[%c1_82, %c3_83] : memref<5x10xf32, #tpu.memory_space<smem>>
    %188 = vector.broadcast %187 : f32 to vector<8x1xf32>
    %189 = arith.mulf %115, %188 : vector<8x1xf32>
    %190 = arith.addf %186, %189 : vector<8x1xf32>
    %c1_84 = arith.constant 1 : index
    %c4_85 = arith.constant 4 : index
    %191 = memref.load %arg4[%c1_84, %c4_85] : memref<5x10xf32, #tpu.memory_space<smem>>
    %192 = vector.broadcast %191 : f32 to vector<8x1xf32>
    %193 = arith.mulf %118, %192 : vector<8x1xf32>
    %194 = arith.addf %190, %193 : vector<8x1xf32>
    %c1_86 = arith.constant 1 : index
    %c5_87 = arith.constant 5 : index
    %195 = memref.load %arg4[%c1_86, %c5_87] : memref<5x10xf32, #tpu.memory_space<smem>>
    %196 = vector.broadcast %195 : f32 to vector<8x1xf32>
    %197 = arith.mulf %121, %196 : vector<8x1xf32>
    %198 = arith.addf %194, %197 : vector<8x1xf32>
    %c1_88 = arith.constant 1 : index
    %c6_89 = arith.constant 6 : index
    %199 = memref.load %arg4[%c1_88, %c6_89] : memref<5x10xf32, #tpu.memory_space<smem>>
    %200 = vector.broadcast %199 : f32 to vector<8x1xf32>
    %201 = arith.mulf %124, %200 : vector<8x1xf32>
    %202 = arith.addf %198, %201 : vector<8x1xf32>
    %c1_90 = arith.constant 1 : index
    %c7_91 = arith.constant 7 : index
    %203 = memref.load %arg4[%c1_90, %c7_91] : memref<5x10xf32, #tpu.memory_space<smem>>
    %204 = vector.broadcast %203 : f32 to vector<8x1xf32>
    %205 = arith.mulf %127, %204 : vector<8x1xf32>
    %206 = arith.addf %202, %205 : vector<8x1xf32>
    %c1_92 = arith.constant 1 : index
    %c8_93 = arith.constant 8 : index
    %207 = memref.load %arg4[%c1_92, %c8_93] : memref<5x10xf32, #tpu.memory_space<smem>>
    %208 = vector.broadcast %207 : f32 to vector<8x1xf32>
    %209 = arith.mulf %130, %208 : vector<8x1xf32>
    %210 = arith.addf %206, %209 : vector<8x1xf32>
    %c1_94 = arith.constant 1 : index
    %c9_95 = arith.constant 9 : index
    %211 = memref.load %arg4[%c1_94, %c9_95] : memref<5x10xf32, #tpu.memory_space<smem>>
    %212 = vector.broadcast %211 : f32 to vector<8x1xf32>
    %213 = arith.mulf %133, %212 : vector<8x1xf32>
    %214 = arith.addf %210, %213 : vector<8x1xf32>
    %c1_96 = arith.constant 1 : index
    %215 = memref.load %arg5[%c1_96] : memref<5xf32, #tpu.memory_space<smem>>
    %216 = vector.broadcast %215 : f32 to vector<8x1xf32>
    %217 = arith.addf %214, %216 : vector<8x1xf32>
    %c2_97 = arith.constant 2 : index
    %c0_98 = arith.constant 0 : index
    %218 = memref.load %arg4[%c2_97, %c0_98] : memref<5x10xf32, #tpu.memory_space<smem>>
    %219 = vector.broadcast %218 : f32 to vector<8x1xf32>
    %220 = arith.mulf %106, %219 : vector<8x1xf32>
    %c2_99 = arith.constant 2 : index
    %c1_100 = arith.constant 1 : index
    %221 = memref.load %arg4[%c2_99, %c1_100] : memref<5x10xf32, #tpu.memory_space<smem>>
    %222 = vector.broadcast %221 : f32 to vector<8x1xf32>
    %223 = arith.mulf %109, %222 : vector<8x1xf32>
    %224 = arith.addf %220, %223 : vector<8x1xf32>
    %c2_101 = arith.constant 2 : index
    %c2_102 = arith.constant 2 : index
    %225 = memref.load %arg4[%c2_101, %c2_102] : memref<5x10xf32, #tpu.memory_space<smem>>
    %226 = vector.broadcast %225 : f32 to vector<8x1xf32>
    %227 = arith.mulf %112, %226 : vector<8x1xf32>
    %228 = arith.addf %224, %227 : vector<8x1xf32>
    %c2_103 = arith.constant 2 : index
    %c3_104 = arith.constant 3 : index
    %229 = memref.load %arg4[%c2_103, %c3_104] : memref<5x10xf32, #tpu.memory_space<smem>>
    %230 = vector.broadcast %229 : f32 to vector<8x1xf32>
    %231 = arith.mulf %115, %230 : vector<8x1xf32>
    %232 = arith.addf %228, %231 : vector<8x1xf32>
    %c2_105 = arith.constant 2 : index
    %c4_106 = arith.constant 4 : index
    %233 = memref.load %arg4[%c2_105, %c4_106] : memref<5x10xf32, #tpu.memory_space<smem>>
    %234 = vector.broadcast %233 : f32 to vector<8x1xf32>
    %235 = arith.mulf %118, %234 : vector<8x1xf32>
    %236 = arith.addf %232, %235 : vector<8x1xf32>
    %c2_107 = arith.constant 2 : index
    %c5_108 = arith.constant 5 : index
    %237 = memref.load %arg4[%c2_107, %c5_108] : memref<5x10xf32, #tpu.memory_space<smem>>
    %238 = vector.broadcast %237 : f32 to vector<8x1xf32>
    %239 = arith.mulf %121, %238 : vector<8x1xf32>
    %240 = arith.addf %236, %239 : vector<8x1xf32>
    %c2_109 = arith.constant 2 : index
    %c6_110 = arith.constant 6 : index
    %241 = memref.load %arg4[%c2_109, %c6_110] : memref<5x10xf32, #tpu.memory_space<smem>>
    %242 = vector.broadcast %241 : f32 to vector<8x1xf32>
    %243 = arith.mulf %124, %242 : vector<8x1xf32>
    %244 = arith.addf %240, %243 : vector<8x1xf32>
    %c2_111 = arith.constant 2 : index
    %c7_112 = arith.constant 7 : index
    %245 = memref.load %arg4[%c2_111, %c7_112] : memref<5x10xf32, #tpu.memory_space<smem>>
    %246 = vector.broadcast %245 : f32 to vector<8x1xf32>
    %247 = arith.mulf %127, %246 : vector<8x1xf32>
    %248 = arith.addf %244, %247 : vector<8x1xf32>
    %c2_113 = arith.constant 2 : index
    %c8_114 = arith.constant 8 : index
    %249 = memref.load %arg4[%c2_113, %c8_114] : memref<5x10xf32, #tpu.memory_space<smem>>
    %250 = vector.broadcast %249 : f32 to vector<8x1xf32>
    %251 = arith.mulf %130, %250 : vector<8x1xf32>
    %252 = arith.addf %248, %251 : vector<8x1xf32>
    %c2_115 = arith.constant 2 : index
    %c9_116 = arith.constant 9 : index
    %253 = memref.load %arg4[%c2_115, %c9_116] : memref<5x10xf32, #tpu.memory_space<smem>>
    %254 = vector.broadcast %253 : f32 to vector<8x1xf32>
    %255 = arith.mulf %133, %254 : vector<8x1xf32>
    %256 = arith.addf %252, %255 : vector<8x1xf32>
    %c2_117 = arith.constant 2 : index
    %257 = memref.load %arg5[%c2_117] : memref<5xf32, #tpu.memory_space<smem>>
    %258 = vector.broadcast %257 : f32 to vector<8x1xf32>
    %259 = arith.addf %256, %258 : vector<8x1xf32>
    %c3_118 = arith.constant 3 : index
    %c0_119 = arith.constant 0 : index
    %260 = memref.load %arg4[%c3_118, %c0_119] : memref<5x10xf32, #tpu.memory_space<smem>>
    %261 = vector.broadcast %260 : f32 to vector<8x1xf32>
    %262 = arith.mulf %106, %261 : vector<8x1xf32>
    %c3_120 = arith.constant 3 : index
    %c1_121 = arith.constant 1 : index
    %263 = memref.load %arg4[%c3_120, %c1_121] : memref<5x10xf32, #tpu.memory_space<smem>>
    %264 = vector.broadcast %263 : f32 to vector<8x1xf32>
    %265 = arith.mulf %109, %264 : vector<8x1xf32>
    %266 = arith.addf %262, %265 : vector<8x1xf32>
    %c3_122 = arith.constant 3 : index
    %c2_123 = arith.constant 2 : index
    %267 = memref.load %arg4[%c3_122, %c2_123] : memref<5x10xf32, #tpu.memory_space<smem>>
    %268 = vector.broadcast %267 : f32 to vector<8x1xf32>
    %269 = arith.mulf %112, %268 : vector<8x1xf32>
    %270 = arith.addf %266, %269 : vector<8x1xf32>
    %c3_124 = arith.constant 3 : index
    %c3_125 = arith.constant 3 : index
    %271 = memref.load %arg4[%c3_124, %c3_125] : memref<5x10xf32, #tpu.memory_space<smem>>
    %272 = vector.broadcast %271 : f32 to vector<8x1xf32>
    %273 = arith.mulf %115, %272 : vector<8x1xf32>
    %274 = arith.addf %270, %273 : vector<8x1xf32>
    %c3_126 = arith.constant 3 : index
    %c4_127 = arith.constant 4 : index
    %275 = memref.load %arg4[%c3_126, %c4_127] : memref<5x10xf32, #tpu.memory_space<smem>>
    %276 = vector.broadcast %275 : f32 to vector<8x1xf32>
    %277 = arith.mulf %118, %276 : vector<8x1xf32>
    %278 = arith.addf %274, %277 : vector<8x1xf32>
    %c3_128 = arith.constant 3 : index
    %c5_129 = arith.constant 5 : index
    %279 = memref.load %arg4[%c3_128, %c5_129] : memref<5x10xf32, #tpu.memory_space<smem>>
    %280 = vector.broadcast %279 : f32 to vector<8x1xf32>
    %281 = arith.mulf %121, %280 : vector<8x1xf32>
    %282 = arith.addf %278, %281 : vector<8x1xf32>
    %c3_130 = arith.constant 3 : index
    %c6_131 = arith.constant 6 : index
    %283 = memref.load %arg4[%c3_130, %c6_131] : memref<5x10xf32, #tpu.memory_space<smem>>
    %284 = vector.broadcast %283 : f32 to vector<8x1xf32>
    %285 = arith.mulf %124, %284 : vector<8x1xf32>
    %286 = arith.addf %282, %285 : vector<8x1xf32>
    %c3_132 = arith.constant 3 : index
    %c7_133 = arith.constant 7 : index
    %287 = memref.load %arg4[%c3_132, %c7_133] : memref<5x10xf32, #tpu.memory_space<smem>>
    %288 = vector.broadcast %287 : f32 to vector<8x1xf32>
    %289 = arith.mulf %127, %288 : vector<8x1xf32>
    %290 = arith.addf %286, %289 : vector<8x1xf32>
    %c3_134 = arith.constant 3 : index
    %c8_135 = arith.constant 8 : index
    %291 = memref.load %arg4[%c3_134, %c8_135] : memref<5x10xf32, #tpu.memory_space<smem>>
    %292 = vector.broadcast %291 : f32 to vector<8x1xf32>
    %293 = arith.mulf %130, %292 : vector<8x1xf32>
    %294 = arith.addf %290, %293 : vector<8x1xf32>
    %c3_136 = arith.constant 3 : index
    %c9_137 = arith.constant 9 : index
    %295 = memref.load %arg4[%c3_136, %c9_137] : memref<5x10xf32, #tpu.memory_space<smem>>
    %296 = vector.broadcast %295 : f32 to vector<8x1xf32>
    %297 = arith.mulf %133, %296 : vector<8x1xf32>
    %298 = arith.addf %294, %297 : vector<8x1xf32>
    %c3_138 = arith.constant 3 : index
    %299 = memref.load %arg5[%c3_138] : memref<5xf32, #tpu.memory_space<smem>>
    %300 = vector.broadcast %299 : f32 to vector<8x1xf32>
    %301 = arith.addf %298, %300 : vector<8x1xf32>
    %c4_139 = arith.constant 4 : index
    %c0_140 = arith.constant 0 : index
    %302 = memref.load %arg4[%c4_139, %c0_140] : memref<5x10xf32, #tpu.memory_space<smem>>
    %303 = vector.broadcast %302 : f32 to vector<8x1xf32>
    %304 = arith.mulf %106, %303 : vector<8x1xf32>
    %c4_141 = arith.constant 4 : index
    %c1_142 = arith.constant 1 : index
    %305 = memref.load %arg4[%c4_141, %c1_142] : memref<5x10xf32, #tpu.memory_space<smem>>
    %306 = vector.broadcast %305 : f32 to vector<8x1xf32>
    %307 = arith.mulf %109, %306 : vector<8x1xf32>
    %308 = arith.addf %304, %307 : vector<8x1xf32>
    %c4_143 = arith.constant 4 : index
    %c2_144 = arith.constant 2 : index
    %309 = memref.load %arg4[%c4_143, %c2_144] : memref<5x10xf32, #tpu.memory_space<smem>>
    %310 = vector.broadcast %309 : f32 to vector<8x1xf32>
    %311 = arith.mulf %112, %310 : vector<8x1xf32>
    %312 = arith.addf %308, %311 : vector<8x1xf32>
    %c4_145 = arith.constant 4 : index
    %c3_146 = arith.constant 3 : index
    %313 = memref.load %arg4[%c4_145, %c3_146] : memref<5x10xf32, #tpu.memory_space<smem>>
    %314 = vector.broadcast %313 : f32 to vector<8x1xf32>
    %315 = arith.mulf %115, %314 : vector<8x1xf32>
    %316 = arith.addf %312, %315 : vector<8x1xf32>
    %c4_147 = arith.constant 4 : index
    %c4_148 = arith.constant 4 : index
    %317 = memref.load %arg4[%c4_147, %c4_148] : memref<5x10xf32, #tpu.memory_space<smem>>
    %318 = vector.broadcast %317 : f32 to vector<8x1xf32>
    %319 = arith.mulf %118, %318 : vector<8x1xf32>
    %320 = arith.addf %316, %319 : vector<8x1xf32>
    %c4_149 = arith.constant 4 : index
    %c5_150 = arith.constant 5 : index
    %321 = memref.load %arg4[%c4_149, %c5_150] : memref<5x10xf32, #tpu.memory_space<smem>>
    %322 = vector.broadcast %321 : f32 to vector<8x1xf32>
    %323 = arith.mulf %121, %322 : vector<8x1xf32>
    %324 = arith.addf %320, %323 : vector<8x1xf32>
    %c4_151 = arith.constant 4 : index
    %c6_152 = arith.constant 6 : index
    %325 = memref.load %arg4[%c4_151, %c6_152] : memref<5x10xf32, #tpu.memory_space<smem>>
    %326 = vector.broadcast %325 : f32 to vector<8x1xf32>
    %327 = arith.mulf %124, %326 : vector<8x1xf32>
    %328 = arith.addf %324, %327 : vector<8x1xf32>
    %c4_153 = arith.constant 4 : index
    %c7_154 = arith.constant 7 : index
    %329 = memref.load %arg4[%c4_153, %c7_154] : memref<5x10xf32, #tpu.memory_space<smem>>
    %330 = vector.broadcast %329 : f32 to vector<8x1xf32>
    %331 = arith.mulf %127, %330 : vector<8x1xf32>
    %332 = arith.addf %328, %331 : vector<8x1xf32>
    %c4_155 = arith.constant 4 : index
    %c8_156 = arith.constant 8 : index
    %333 = memref.load %arg4[%c4_155, %c8_156] : memref<5x10xf32, #tpu.memory_space<smem>>
    %334 = vector.broadcast %333 : f32 to vector<8x1xf32>
    %335 = arith.mulf %130, %334 : vector<8x1xf32>
    %336 = arith.addf %332, %335 : vector<8x1xf32>
    %c4_157 = arith.constant 4 : index
    %c9_158 = arith.constant 9 : index
    %337 = memref.load %arg4[%c4_157, %c9_158] : memref<5x10xf32, #tpu.memory_space<smem>>
    %338 = vector.broadcast %337 : f32 to vector<8x1xf32>
    %339 = arith.mulf %133, %338 : vector<8x1xf32>
    %340 = arith.addf %336, %339 : vector<8x1xf32>
    %c4_159 = arith.constant 4 : index
    %341 = memref.load %arg5[%c4_159] : memref<5xf32, #tpu.memory_space<smem>>
    %342 = vector.broadcast %341 : f32 to vector<8x1xf32>
    %343 = arith.addf %340, %342 : vector<8x1xf32>
    %cst_160 = arith.constant 2.000000e-01 : f32
    %344 = vector.broadcast %cst_160 : f32 to vector<8x1xf32>
    %345 = arith.mulf %344, %175 : vector<8x1xf32>
    %346 = arith.maximumf %175, %345 : vector<8x1xf32>
    %cst_161 = arith.constant 2.000000e-01 : f32
    %347 = vector.broadcast %cst_161 : f32 to vector<8x1xf32>
    %348 = arith.mulf %347, %217 : vector<8x1xf32>
    %349 = arith.maximumf %217, %348 : vector<8x1xf32>
    %cst_162 = arith.constant 2.000000e-01 : f32
    %350 = vector.broadcast %cst_162 : f32 to vector<8x1xf32>
    %351 = arith.mulf %350, %259 : vector<8x1xf32>
    %352 = arith.maximumf %259, %351 : vector<8x1xf32>
    %cst_163 = arith.constant 2.000000e-01 : f32
    %353 = vector.broadcast %cst_163 : f32 to vector<8x1xf32>
    %354 = arith.mulf %353, %301 : vector<8x1xf32>
    %355 = arith.maximumf %301, %354 : vector<8x1xf32>
    %cst_164 = arith.constant 2.000000e-01 : f32
    %356 = vector.broadcast %cst_164 : f32 to vector<8x1xf32>
    %357 = arith.mulf %356, %343 : vector<8x1xf32>
    %358 = arith.maximumf %343, %357 : vector<8x1xf32>
    %c0_165 = arith.constant 0 : index
    %c0_166 = arith.constant 0 : index
    %359 = memref.load %arg6[%c0_165, %c0_166] : memref<2x5xf32, #tpu.memory_space<smem>>
    %360 = vector.broadcast %359 : f32 to vector<8x1xf32>
    %361 = arith.mulf %346, %360 : vector<8x1xf32>
    %c0_167 = arith.constant 0 : index
    %c1_168 = arith.constant 1 : index
    %362 = memref.load %arg6[%c0_167, %c1_168] : memref<2x5xf32, #tpu.memory_space<smem>>
    %363 = vector.broadcast %362 : f32 to vector<8x1xf32>
    %364 = arith.mulf %349, %363 : vector<8x1xf32>
    %365 = arith.addf %361, %364 : vector<8x1xf32>
    %c0_169 = arith.constant 0 : index
    %c2_170 = arith.constant 2 : index
    %366 = memref.load %arg6[%c0_169, %c2_170] : memref<2x5xf32, #tpu.memory_space<smem>>
    %367 = vector.broadcast %366 : f32 to vector<8x1xf32>
    %368 = arith.mulf %352, %367 : vector<8x1xf32>
    %369 = arith.addf %365, %368 : vector<8x1xf32>
    %c0_171 = arith.constant 0 : index
    %c3_172 = arith.constant 3 : index
    %370 = memref.load %arg6[%c0_171, %c3_172] : memref<2x5xf32, #tpu.memory_space<smem>>
    %371 = vector.broadcast %370 : f32 to vector<8x1xf32>
    %372 = arith.mulf %355, %371 : vector<8x1xf32>
    %373 = arith.addf %369, %372 : vector<8x1xf32>
    %c0_173 = arith.constant 0 : index
    %c4_174 = arith.constant 4 : index
    %374 = memref.load %arg6[%c0_173, %c4_174] : memref<2x5xf32, #tpu.memory_space<smem>>
    %375 = vector.broadcast %374 : f32 to vector<8x1xf32>
    %376 = arith.mulf %358, %375 : vector<8x1xf32>
    %377 = arith.addf %373, %376 : vector<8x1xf32>
    %c0_175 = arith.constant 0 : index
    %378 = memref.load %arg7[%c0_175] : memref<2xf32, #tpu.memory_space<smem>>
    %379 = vector.broadcast %378 : f32 to vector<8x1xf32>
    %380 = arith.addf %377, %379 : vector<8x1xf32>
    %c1_176 = arith.constant 1 : index
    %c0_177 = arith.constant 0 : index
    %381 = memref.load %arg6[%c1_176, %c0_177] : memref<2x5xf32, #tpu.memory_space<smem>>
    %382 = vector.broadcast %381 : f32 to vector<8x1xf32>
    %383 = arith.mulf %346, %382 : vector<8x1xf32>
    %c1_178 = arith.constant 1 : index
    %c1_179 = arith.constant 1 : index
    %384 = memref.load %arg6[%c1_178, %c1_179] : memref<2x5xf32, #tpu.memory_space<smem>>
    %385 = vector.broadcast %384 : f32 to vector<8x1xf32>
    %386 = arith.mulf %349, %385 : vector<8x1xf32>
    %387 = arith.addf %383, %386 : vector<8x1xf32>
    %c1_180 = arith.constant 1 : index
    %c2_181 = arith.constant 2 : index
    %388 = memref.load %arg6[%c1_180, %c2_181] : memref<2x5xf32, #tpu.memory_space<smem>>
    %389 = vector.broadcast %388 : f32 to vector<8x1xf32>
    %390 = arith.mulf %352, %389 : vector<8x1xf32>
    %391 = arith.addf %387, %390 : vector<8x1xf32>
    %c1_182 = arith.constant 1 : index
    %c3_183 = arith.constant 3 : index
    %392 = memref.load %arg6[%c1_182, %c3_183] : memref<2x5xf32, #tpu.memory_space<smem>>
    %393 = vector.broadcast %392 : f32 to vector<8x1xf32>
    %394 = arith.mulf %355, %393 : vector<8x1xf32>
    %395 = arith.addf %391, %394 : vector<8x1xf32>
    %c1_184 = arith.constant 1 : index
    %c4_185 = arith.constant 4 : index
    %396 = memref.load %arg6[%c1_184, %c4_185] : memref<2x5xf32, #tpu.memory_space<smem>>
    %397 = vector.broadcast %396 : f32 to vector<8x1xf32>
    %398 = arith.mulf %358, %397 : vector<8x1xf32>
    %399 = arith.addf %395, %398 : vector<8x1xf32>
    %c1_186 = arith.constant 1 : index
    %400 = memref.load %arg7[%c1_186] : memref<2xf32, #tpu.memory_space<smem>>
    %401 = vector.broadcast %400 : f32 to vector<8x1xf32>
    %402 = arith.addf %399, %401 : vector<8x1xf32>
    %c0_187 = arith.constant 0 : index
    %c0_188 = arith.constant 0 : index
    %c0_189 = arith.constant 0 : index
    %403 = vector.load %arg8[%c0_187, %c0_188, %c0_189] : memref<2x8x1xf32, #tpu.memory_space<vmem>>, vector<1x8x1xf32>
    %404 = vector.shape_cast %403 : vector<1x8x1xf32> to vector<8x1xf32>
    %405 = vector.shape_cast %380 : vector<8x1xf32> to vector<1x8x1xf32>
    tpu.vector_store %arg8[%c0_187, %c0_188, %c0_189], %405 {strides = array<i32>} : memref<2x8x1xf32, #tpu.memory_space<vmem>>, vector<1x8x1xf32>,
    %c1_190 = arith.constant 1 : index
    %c0_191 = arith.constant 0 : index
    %c0_192 = arith.constant 0 : index
    %406 = vector.load %arg8[%c1_190, %c0_191, %c0_192] : memref<2x8x1xf32, #tpu.memory_space<vmem>>, vector<1x8x1xf32>
    %407 = vector.shape_cast %406 : vector<1x8x1xf32> to vector<8x1xf32>
    %408 = vector.shape_cast %402 : vector<8x1xf32> to vector<1x8x1xf32>
    tpu.vector_store %arg8[%c1_190, %c0_191, %c0_192], %408 {strides = array<i32>} : memref<2x8x1xf32, #tpu.memory_space<vmem>>, vector<1x8x1xf32>,
    return
  }
  func.func @transform_0(%arg0: i32) -> (i32, i32, i32) {
    %c0_i32 = arith.constant 0 : i32
    %c0_i32_0 = arith.constant 0 : i32
    %c0_i32_1 = arith.constant 0 : i32
    return %c0_i32, %c0_i32_0, %arg0 : i32, i32, i32
  }
  func.func @transform_1(%arg0: i32) -> (i32, i32) {
    %c0_i32 = arith.constant 0 : i32
    %c0_i32_0 = arith.constant 0 : i32
    %c0_i32_1 = arith.constant 0 : i32
    return %c0_i32, %c0_i32_0 : i32, i32
  }
  func.func @transform_2(%arg0: i32) -> i32 {
    %c0_i32 = arith.constant 0 : i32
    %c0_i32_0 = arith.constant 0 : i32
    return %c0_i32 : i32
  }
  func.func @transform_3(%arg0: i32) -> (i32, i32) {
    %c0_i32 = arith.constant 0 : i32
    %c0_i32_0 = arith.constant 0 : i32
    %c0_i32_1 = arith.constant 0 : i32
    return %c0_i32, %c0_i32_0 : i32, i32
  }
  func.func @transform_4(%arg0: i32) -> i32 {
    %c0_i32 = arith.constant 0 : i32
    %c0_i32_0 = arith.constant 0 : i32
    return %c0_i32 : i32
  }
  func.func @transform_5(%arg0: i32) -> (i32, i32) {
    %c0_i32 = arith.constant 0 : i32
    %c0_i32_0 = arith.constant 0 : i32
    %c0_i32_1 = arith.constant 0 : i32
    return %c0_i32, %c0_i32_0 : i32, i32
  }
  func.func @transform_6(%arg0: i32) -> i32 {
    %c0_i32 = arith.constant 0 : i32
    %c0_i32_0 = arith.constant 0 : i32
    return %c0_i32 : i32
  }
  func.func @transform_7(%arg0: i32) -> (i32, i32, i32) {
    %c0_i32 = arith.constant 0 : i32
    %c0_i32_0 = arith.constant 0 : i32
    %c0_i32_1 = arith.constant 0 : i32
    return %c0_i32, %c0_i32_0, %arg0 : i32, i32, i32
  }
}

</mosaic_0001>

<bundles_post_ra>
// kernel: discriminator_forward_fm.1
= control target key start
LH: loop header
LB: loop body
LE: loop exit
PB: predicated region body
PF: predicated region fallthrough
CT: control target
= control target key end

     0   :  { %12 = vsyncpa [#allocation3], 0  ;;  %s1120_s0 = inlined_call_operand.vmem [shape: f32[2,8,1], index: 0, kind: input, shape index: {}]   ;;  %s1121_s1 = inlined_call_operand.vmem [shape: f32[10,2], index: 1, kind: input, shape index: {}]   ;;  %s1122_s2 = inlined_call_operand.vmem [shape: f32[10], index: 2, kind: input, shape index: {}]   ;;  %s1123_s3 = inlined_call_operand.vmem [shape: f32[5,10], index: 3, kind: input, shape index: {}]   ;;  %s1124_s4 = inlined_call_operand.vmem [shape: f32[5], index: 4, kind: input, shape index: {}]   ;;  %s1125_s5 = inlined_call_operand.vmem [shape: f32[2,5], index: 5, kind: input, shape index: {}]   ;;  %s1126_s6 = inlined_call_operand.vmem [shape: f32[2], index: 6, kind: input, shape index: {}]   ;;  %s1127_s7 = inlined_call_operand.vmem [shape: f32[2,8,1], index: 7, kind: output, shape index: {}]  }
   0x1   :  { %13 = vsyncpa [#allocation5], 0 }
   0x2   :  { %14 = vsyncpa [#allocation8], 0  ;;  %s36_s26 = sshll.u32 %s1122_s2, 4  ;;  %s37_s26 = int_to_ptr.vmem [resolvable:$true] %s36_s26 }
   0x3   :  { %15 = vsyncpa [#allocation11], 0  ;;  %s56_s29 = sshll.u32 %s1124_s4, 4  ;;  %s599_s30 = scalar_lea.vmem %s37_s26, 16  ;;  %s57_s29 = int_to_ptr.vmem [resolvable:$true] %s56_s29 }
   0x4   :  { %p600_p0 = scmp.ne.s32.totalorder %s37_s26, %s599_s30  ;;  %p604_p1 = scmp.lt.s32.totalorder %s37_s26, %s37_s26 }
   0x5   :  { %p605_p2 = scmp.lt.s32.totalorder %s599_s30, %s599_s30 }
   0x7   :  { %p606_p3 = por %p605_p2, %p604_p1 }
   0x9   :  { %p607_p4 = pnand %p606_p3, %p600_p0 }
   0xb   :  { %610 = shalt.err (!%p607_p4)
}
   0xc   :  { %s679_s8 = smov [#allocation4]   ;;  %s611_s9 = scalar_lea.vmem %s57_s29, 16 }
   0xd   :  { %39 = dma.vmem_to_smem %s37_s26, 16, %s679_s8, [#allocation5]  }
   0xe   :  { %p612_p5 = scmp.ne.s32.totalorder %s57_s29, %s611_s9  ;;  %p616_p6 = scmp.lt.s32.totalorder %s57_s29, %s57_s29 }
   0xf   :  { %p617_p7 = scmp.lt.s32.totalorder %s611_s9, %s611_s9 }
  0x11   :  { %p618_p8 = por %p617_p7, %p616_p6 }
  0x13   :  { %p619_p9 = pnand %p618_p8, %p612_p5 }
  0x15   :  { %622 = shalt.err (!%p619_p9)
}
  0x16   :  { %s680_s2 = smov [#allocation7]   ;;  %s23_s11 = sshll.u32 %s1121_s1, 4  ;;  %s24_s11 = int_to_ptr.vmem [resolvable:$true] %s23_s11 }
  0x17   :  { %59 = dma.vmem_to_smem %s57_s29, 16, %s680_s2, [#allocation8]  }
  0x18   :  { %s46_s14 = sshll.u32 %s1123_s3, 4  ;;  %s623_s15 = scalar_lea.vmem %s24_s11, 256  ;;  %s47_s14 = int_to_ptr.vmem [resolvable:$true] %s46_s14 }
  0x19   :  { %p624_p10 = scmp.ne.s32.totalorder %s24_s11, %s623_s15  ;;  %p628_p11 = scmp.lt.s32.totalorder %s24_s11, %s24_s11 }
  0x1a   :  { %p629_p12 = scmp.lt.s32.totalorder %s623_s15, %s623_s15 }
  0x1c   :  { %p630_p13 = por %p629_p12, %p628_p11 }
  0x1e   :  { %p631_p0 = pnand %p630_p13, %p624_p10 }
  0x20   :  { %634 = shalt.err (!%p631_p0)
}
  0x21   :  { %s681_s16 = smov [#allocation2]   ;;  %s682_s17 = smov 128  }
  0x22   :  { %s683_s18 = smov 8   ;;  %s635_s19 = scalar_lea.vmem %s47_s14, 128 }
  0x23   :  { %29 = dma.vmem_to_smem %s24_s11, 256, %s681_s16, [#allocation3], %s682_s17, %s682_s17, %s683_s18  }
  0x24   :  { %p636_p1 = scmp.ne.s32.totalorder %s47_s14, %s635_s19  ;;  %p640_p2 = scmp.lt.s32.totalorder %s47_s14, %s47_s14 }
  0x25   :  { %p641_p3 = scmp.lt.s32.totalorder %s635_s19, %s635_s19 }
  0x27   :  { %p642_p4 = por %p641_p3, %p640_p2 }
  0x29   :  { %p643_p5 = pnand %p642_p4, %p636_p1 }
  0x2b   :  { %646 = shalt.err (!%p643_p5)
}
  0x2c   :  { %s684_s1 = smov [#allocation6]   ;;  %s66_s21 = sshll.u32 %s1125_s5, 4  ;;  %s67_s21 = int_to_ptr.vmem [resolvable:$true] %s66_s21 }
  0x2d   :  { %49 = dma.vmem_to_smem %s47_s14, 128, %s684_s1, [#allocation5]  }
  0x2e   :  { %s76_s24 = sshll.u32 %s1126_s6, 4  ;;  %s647_s25 = scalar_lea.vmem %s67_s21, 32  ;;  %s77_s24 = int_to_ptr.vmem [resolvable:$true] %s76_s24 }
  0x2f   :  { %p648_p6 = scmp.ne.s32.totalorder %s67_s21, %s647_s25  ;;  %p652_p7 = scmp.lt.s32.totalorder %s67_s21, %s67_s21 }
  0x30   :  { %p653_p8 = scmp.lt.s32.totalorder %s647_s25, %s647_s25 }
  0x32   :  { %p654_p9 = por %p653_p8, %p652_p7 }
  0x34   :  { %p655_p10 = pnand %p654_p9, %p648_p6 }
  0x36   :  { %658 = shalt.err (!%p655_p10)
}
  0x37   :  { %s685_s26 = smov [#allocation9]   ;;  %s659_s27 = scalar_lea.vmem %s77_s24, 16 }
  0x38   :  { %69 = dma.vmem_to_smem %s67_s21, 32, %s685_s26, [#allocation8]  }
  0x39   :  { %p660_p11 = scmp.ne.s32.totalorder %s77_s24, %s659_s27  ;;  %p664_p12 = scmp.lt.s32.totalorder %s77_s24, %s77_s24 }
  0x3a   :  { %p665_p13 = scmp.lt.s32.totalorder %s659_s27, %s659_s27 }
  0x3c   :  { %p666_p0 = por %p665_p13, %p664_p12 }
  0x3e   :  { %p667_p1 = pnand %p666_p0, %p660_p11 }
  0x40   :  { %670 = shalt.err (!%p667_p1)
}
  0x41   :  { %s686_s5 = smov [#allocation10]  }
  0x42   :  { %79 = dma.vmem_to_smem %s77_s24, 16, %s686_s5, [#allocation11]  }
  0x43   :  { %671 = dma.done.wait [#allocation3], 256  }
  0x44   :  { %672 = vsyncadd [#allocation3], 4294967040 }
  0x45   :  { %673 = dma.done.wait [#allocation5], 144  }
  0x46   :  { %674 = vsyncadd [#allocation5], 4294967152 }
  0x47   :  { %675 = dma.done.wait [#allocation8], 48  }
  0x48   :  { %676 = vsyncadd [#allocation8], 4294967248 }
  0x49   :  { %677 = dma.done.wait [#allocation11], 16  }
  0x4a   :  { %678 = vsyncadd [#allocation11], 4294967280 }
  0x4b   :  { %98 = sfence }
  0x4c   :  { %s102_s6 = sld [smem:[#allocation2]]  ;;  %s499_s28 = sld [smem:[#allocation2 + $0x1]]  ;;  %v752_v0 = vld [vmem:[%s1120_s0] sm:$0xff]  ;;  %v757_v1 = vld [vmem:[%s1120_s0 + $0x8] sm:$0xff]  ;;  %vm486_vm0 = vcmask 7168  }
  0x4d   :  { %s745_s29 = sld [smem:[#allocation4]]  ;;  %s501_s8 = sld [smem:[#allocation2 + $0x81]] }
  0x4e   :  { %s500_s30 = sld [smem:[#allocation2 + $0x80]]  ;;  %s747_s9 = sld [smem:[#allocation4 + $0x1]] }
  0x4f   :  { %s503_s2 = sld [smem:[#allocation2 + $0x100]]  ;;  %s504_s4 = sld [smem:[#allocation2 + $0x101]] }
  0x50   :  { %s759_s14 = sld [smem:[#allocation4 + $0x2]]  ;;  %s761_s15 = sld [smem:[#allocation2 + $0x180]] }
  0x51   :  { %s763_s16 = sld [smem:[#allocation2 + $0x181]]  ;;  %s765_s17 = sld [smem:[#allocation4 + $0x3]] }
  0x52   :  { %v103_v2 = vstv %s102_s6  ;;  %v106_v3 = vstv %s499_s28  ;;  %s767_s18 = sld [smem:[#allocation2 + $0x200]]  ;;  %s769_s19 = sld [smem:[#allocation2 + $0x201]] }
  0x53   :  { %v104_v4 = vmul.f32 %v103_v2, %v752_v0  ;;  %v107_v5 = vmul.f32 %v757_v1, %v106_v3  ;;  %s773_s0 = sld [smem:[#allocation4 + $0x4]]  ;;  %s775_s1 = sld [smem:[#allocation2 + $0x280]]  ;;  %v110_v7 = vstv %s745_s29  ;;  %v116_v9 = vstv %s501_s8 }
  0x54   :  { %v113_v6 = vstv %s500_s30  ;;  %s779_s3 = sld [smem:[#allocation2 + $0x281]]  ;;  %s781_s20 = sld [smem:[#allocation4 + $0x5]]  ;;  %v117_v11 = vmul.f32 %v757_v1, %v116_v9  ;;  %v120_v14 = vstv %s747_s9 }
  0x55   :  { %v114_v8 = vmul.f32 %v113_v6, %v752_v0  ;;  %v108_v10 = vadd.f32 %v107_v5, %v104_v4  ;;  %v123_v12 = vstv %s503_s2  ;;  %v126_v13 = vstv %s504_s4  ;;  %s784_s21 = sld [smem:[#allocation2 + $0x300]]  ;;  %s786_s22 = sld [smem:[#allocation2 + $0x301]] }
  0x56   :  { %v124_v15 = vmul.f32 %v123_v12, %v752_v0  ;;  %v127_v16 = vmul.f32 %v757_v1, %v126_v13  ;;  %v133_v17 = vstv %s761_s15  ;;  %s792_s23 = sld [smem:[#allocation4 + $0x6]]  ;;  %s794_s24 = sld [smem:[#allocation2 + $0x380]]  ;;  %v130_v19 = vstv %s759_s14 }
  0x57   :  { %v118_v18 = vadd.f32 %v117_v11, %v114_v8  ;;  %v134_v20 = vmul.f32 %v133_v17, %v752_v0  ;;  %v136_v21 = vstv %s763_s16  ;;  %s799_s25 = sld [smem:[#allocation2 + $0x381]]  ;;  %s801_s26 = sld [smem:[#allocation4 + $0x7]]  ;;  %v803_v22 = vadd.f32 %v110_v7, %v108_v10 }
  0x58   :  { %v128_v23 = vadd.f32 %v127_v16, %v124_v15  ;;  %v137_v24 = vmul.f32 %v757_v1, %v136_v21  ;;  %v143_v25 = vstv %s767_s18  ;;  %s807_s27 = sld [smem:[#allocation2 + $0x400]]  ;;  %s809_s5 = sld [smem:[#allocation2 + $0x401]]  ;;  %v140_v27 = vstv %s765_s17 }
  0x59   :  { %v121_v26 = vadd.f32 %v120_v14, %v118_v18  ;;  %v144_v28 = vmul.f32 %v143_v25, %v752_v0  ;;  %v146_v29 = vstv %s769_s19  ;;  %s814_s6 = sld [smem:[#allocation2 + $0x480]]  ;;  %v150_v32 = vstv %s773_s0  ;;  %s821_s29 = sld [smem:[#allocation2 + $0x481]] }
  0x5a   :  { %v138_v30 = vadd.f32 %v137_v24, %v134_v20  ;;  %v147_v31 = vmul.f32 %v757_v1, %v146_v29  ;;  %v153_v33 = vstv %s775_s1  ;;  %s819_s28 = sld [smem:[#allocation4 + $0x8]]  ;;  %v131_v34 = vadd.f32 %v130_v19, %v128_v23  ;;  %s826_s30 = sld [smem:[#allocation4 + $0x9]] }
  0x5b   :  { %v154_v35 = vmul.f32 %v153_v33, %v752_v0  ;;  %v156_v36 = vstv %s779_s3  ;;  %v163_v37 = vstv %s784_s21  ;;  %v160_v40 = vstv %s781_s20  ;;  %s843_s8 = sld [smem:[#allocation6]]  ;;  %s845_s9 = sld [smem:[#allocation6 + $0x1]] }
  0x5c   :  { %v148_v38 = vadd.f32 %v147_v31, %v144_v28  ;;  %v157_v39 = vmul.f32 %v757_v1, %v156_v36  ;;  %v164_v41 = vmul.f32 %v163_v37, %v752_v0  ;;  %v141_v42 = vadd.f32 %v140_v27, %v138_v30  ;;  %s849_s2 = sld [smem:[#allocation6 + $0x2]]  ;;  %s854_s4 = sld [smem:[#allocation6 + $0x3]] }
  0x5d   :  { %v166_v43 = vstv %s786_s22  ;;  %v173_v44 = vstv %s794_s24  ;;  %v176_v45 = vstv %s799_s25  ;;  %v170_v48 = vstv %s792_s23  ;;  %s856_s10 = sld [smem:[#allocation6 + $0x4]]  ;;  %s860_s11 = sld [smem:[#allocation6 + $0x5]] }
  0x5e   :  { %v158_v46 = vadd.f32 %v157_v39, %v154_v35  ;;  %v167_v47 = vmul.f32 %v757_v1, %v166_v43  ;;  %v174_v49 = vmul.f32 %v173_v44, %v752_v0  ;;  %v151_v50 = vadd.f32 %v150_v32, %v148_v38  ;;  %s862_s12 = sld [smem:[#allocation6 + $0x6]]  ;;  %s869_s13 = sld [smem:[#allocation6 + $0x7]] }
  0x5f   :  { %v177_v51 = vmul.f32 %v757_v1, %v176_v45  ;;  %v183_v52 = vstv %s807_s27  ;;  %v186_v53 = vstv %s809_s5  ;;  %v180_v55 = vstv %s801_s26  ;;  %s871_s14 = sld [smem:[#allocation6 + $0x8]]  ;;  %s873_s15 = sld [smem:[#allocation6 + $0x9]] }
  0x60   :  { %v168_v54 = vadd.f32 %v167_v47, %v164_v41  ;;  %v184_v56 = vmul.f32 %v183_v52, %v752_v0  ;;  %v187_v57 = vmul.f32 %v757_v1, %v186_v53  ;;  %v161_v58 = vadd.f32 %v160_v40, %v158_v46  ;;  %s875_s16 = sld [smem:[#allocation6 + $0x80]]  ;;  %s881_s17 = sld [smem:[#allocation6 + $0x81]] }
  0x61   :  { %v178_v59 = vadd.f32 %v177_v51, %v174_v49  ;;  %v193_v60 = vstv %s814_s6  ;;  %v196_v61 = vstv %s821_s29  ;;  %v190_v63 = vstv %s819_s28  ;;  %s883_s18 = sld [smem:[#allocation6 + $0x82]]  ;;  %s889_s19 = sld [smem:[#allocation6 + $0x83]] }
  0x62   :  { %v188_v62 = vadd.f32 %v187_v57, %v184_v56  ;;  %v194_v2 = vmul.f32 %v193_v60, %v752_v0  ;;  %v197_v3 = vmul.f32 %v757_v1, %v196_v61  ;;  %v171_v4 = vadd.f32 %v170_v48, %v168_v54  ;;  %s891_s0 = sld [smem:[#allocation6 + $0x84]]  ;;  %s895_s1 = sld [smem:[#allocation6 + $0x85]] }
  0x63   :  { %v200_v5 = vstv %s826_s30  ;;  %v202_v6 = vmul.f32 0.2, %v803_v22  ;;  %v204_v7 = vmul.f32 0.2, %v121_v26  ;;  %v181_v8 = vadd.f32 %v180_v55, %v178_v59  ;;  %s902_s3 = sld [smem:[#allocation6 + $0x86]]  ;;  %s904_s20 = sld [smem:[#allocation6 + $0x87]] }
  0x64   :  { %v198_v9 = vadd.f32 %v197_v3, %v194_v2  ;;  %v206_v10 = vmul.f32 0.2, %v131_v34  ;;  %v208_v11 = vmul.f32 0.2, %v141_v42  ;;  %v191_v0 = vadd.f32 %v190_v63, %v188_v62  ;;  %s910_s21 = sld [smem:[#allocation7]]  ;;  %s927_s23 = sld [smem:[#allocation6 + $0x101]] }
  0x65   :  { %v865_v1 = vmax.f32 %v803_v22, %v202_v6  ;;  %v867_v12 = vmax.f32 %v121_v26, %v204_v7  ;;  %v210_v13 = vmul.f32 0.2, %v151_v50  ;;  %v212_v15 = vmul.f32 0.2, %v161_v58  ;;  %s921_s22 = sld [smem:[#allocation6 + $0x100]]  ;;  %s929_s24 = sld [smem:[#allocation6 + $0x102]] }
  0x66   :  { %v201_v14 = vadd.f32 %v200_v5, %v198_v9  ;;  %v877_v16 = vmax.f32 %v131_v34, %v206_v10  ;;  %v879_v17 = vmax.f32 %v141_v42, %v208_v11  ;;  %v214_v18 = vmul.f32 0.2, %v171_v4  ;;  %s934_s25 = sld [smem:[#allocation6 + $0x88]]  ;;  %s936_s26 = sld [smem:[#allocation6 + $0x103]] }
  0x67   :  { %v885_v19 = vmax.f32 %v151_v50, %v210_v13  ;;  %v216_v20 = vmul.f32 0.2, %v181_v8  ;;  %v223_v21 = vstv %s843_s8  ;;  %v226_v22 = vstv %s845_s9  ;;  %s942_s27 = sld [smem:[#allocation6 + $0x89]]  ;;  %s944_s5 = sld [smem:[#allocation6 + $0x104]] }
  0x68   :  { %v218_v23 = vmul.f32 0.2, %v191_v0  ;;  %v220_v24 = vmul.f32 0.2, %v201_v14  ;;  %v224_v25 = vmul.f32 %v223_v21, %v865_v1  ;;  %v227_v26 = vmul.f32 %v226_v22, %v867_v12  ;;  %s949_s6 = sld [smem:[#allocation7 + $0x1]]  ;;  %s951_s28 = sld [smem:[#allocation6 + $0x105]] }
  0x69   :  { %v897_v27 = vmax.f32 %v161_v58, %v212_v15  ;;  %v230_v28 = vstv %s849_s2  ;;  %v234_v29 = vstv %s854_s4  ;;  %v238_v30 = vstv %s856_s10  ;;  %s956_s29 = sld [smem:[#allocation6 + $0x106]]  ;;  %s958_s30 = sld [smem:[#allocation6 + $0x107]] }
  0x6a   :  { %v906_v31 = vmax.f32 %v171_v4, %v214_v18  ;;  %v228_v32 = vadd.f32 %v227_v26, %v224_v25  ;;  %v231_v33 = vmul.f32 %v230_v28, %v877_v16  ;;  %v235_v34 = vmul.f32 %v234_v29, %v879_v17  ;;  %s966_s8 = sld [smem:[#allocation6 + $0x108]]  ;;  %s976_s2 = sld [smem:[#allocation6 + $0x181]] }
  0x6b   :  { %v912_v35 = vmax.f32 %v181_v8, %v216_v20  ;;  %v242_v36 = vstv %s860_s11  ;;  %v246_v37 = vstv %s862_s12  ;;  %v916_v38 = vmax.f32 %v191_v0, %v218_v23  ;;  %s971_s9 = sld [smem:[#allocation6 + $0x180]]  ;;  %s978_s4 = sld [smem:[#allocation6 + $0x182]] }
  0x6c   :  { %v918_v39 = vmax.f32 %v201_v14, %v220_v24  ;;  %v232_v40 = vadd.f32 %v231_v33, %v228_v32  ;;  %v239_v41 = vmul.f32 %v238_v30, %v885_v19  ;;  %v243_v42 = vmul.f32 %v242_v36, %v897_v27  ;;  %s983_s10 = sld [smem:[#allocation6 + $0x183]]  ;;  %s988_s11 = sld [smem:[#allocation6 + $0x109]] }
  0x6d   :  { %v250_v43 = vstv %s869_s13  ;;  %v254_v44 = vstv %s871_s14  ;;  %v265_v45 = vstv %s875_s16  ;;  %v247_v47 = vmul.f32 %v246_v37, %v906_v31  ;;  %s990_s12 = sld [smem:[#allocation6 + $0x184]]  ;;  %s994_s13 = sld [smem:[#allocation7 + $0x2]] }
  0x6e   :  { %v236_v46 = vadd.f32 %v235_v34, %v232_v40  ;;  %v266_v48 = vmul.f32 %v265_v45, %v865_v1  ;;  %v268_v49 = vstv %s881_s17  ;;  %v258_v50 = vstv %s873_s15  ;;  %s996_s14 = sld [smem:[#allocation6 + $0x185]]  ;;  %s1001_s15 = sld [smem:[#allocation6 + $0x186]] }
  0x6f   :  { %v269_v51 = vmul.f32 %v268_v49, %v867_v12  ;;  %v272_v52 = vstv %s883_s18  ;;  %v276_v53 = vstv %s889_s19  ;;  %v280_v57 = vstv %s891_s0  ;;  %s1003_s16 = sld [smem:[#allocation6 + $0x187]]  ;;  %s1010_s17 = sld [smem:[#allocation6 + $0x188]] }
  0x70   :  { %v240_v54 = vadd.f32 %v239_v41, %v236_v46  ;;  %v273_v55 = vmul.f32 %v272_v52, %v877_v16  ;;  %v277_v56 = vmul.f32 %v276_v53, %v879_v17  ;;  %v284_v59 = vstv %s895_s1  ;;  %s1015_s18 = sld [smem:[#allocation6 + $0x200]]  ;;  %s1017_s19 = sld [smem:[#allocation6 + $0x201]] }
  0x71   :  { %v270_v58 = vadd.f32 %v269_v51, %v266_v48  ;;  %v288_v60 = vstv %s902_s3  ;;  %v292_v61 = vstv %s904_s20  ;;  %v251_v63 = vmul.f32 %v250_v43, %v912_v35  ;;  %s1022_s0 = sld [smem:[#allocation6 + $0x202]]  ;;  %s1024_s1 = sld [smem:[#allocation6 + $0x203]] }
  0x72   :  { %v244_v62 = vadd.f32 %v243_v42, %v240_v54  ;;  %v255_v2 = vmul.f32 %v254_v44, %v916_v38  ;;  %v262_v3 = vstv %s910_s21  ;;  %v259_v4 = vmul.f32 %v258_v50, %v918_v39  ;;  %s1032_s3 = sld [smem:[#allocation6 + $0x189]]  ;;  %s1034_s20 = sld [smem:[#allocation6 + $0x204]] }
  0x73   :  { %v274_v5 = vadd.f32 %v273_v55, %v270_v58  ;;  %v281_v6 = vmul.f32 %v280_v57, %v885_v19  ;;  %v285_v7 = vmul.f32 %v284_v59, %v897_v27  ;;  %v289_v9 = vmul.f32 %v288_v60, %v906_v31  ;;  %s1052_s21 = sld [smem:[#allocation6 + $0x207]] }
  0x74   :  { %v248_v8 = vadd.f32 %v247_v47, %v244_v62  ;;  %v293_v10 = vmul.f32 %v292_v61, %v912_v35  ;;  %v307_v11 = vstv %s921_s22  ;;  %v310_v14 = vstv %s927_s23  ;;  %s1038_s22 = sld [smem:[#allocation6 + $0x205]]  ;;  %s1045_s23 = sld [smem:[#allocation6 + $0x206]] }
  0x75   :  { %v278_v0 = vadd.f32 %v277_v56, %v274_v5  ;;  %v308_v13 = vmul.f32 %v307_v11, %v865_v1  ;;  %v314_v15 = vstv %s929_s24  ;;  %v311_v20 = vmul.f32 %v310_v14, %v867_v12  ;;  %s1056_s24 = sld [smem:[#allocation6 + $0x208]] }
  0x76   :  { %v252_v18 = vadd.f32 %v251_v63, %v248_v8  ;;  %v315_v21 = vmul.f32 %v314_v15, %v877_v16  ;;  %v318_v22 = vstv %s936_s26  ;;  %v296_v24 = vstv %s934_s25  ;;  %s1062_s25 = sld [smem:[#allocation9]]  ;;  %s1066_s26 = sld [smem:[#allocation9 + $0x1]] }
  0x77   :  { %v282_v23 = vadd.f32 %v281_v6, %v278_v0  ;;  %v300_v25 = vstv %s942_s27  ;;  %v322_v26 = vstv %s944_s5  ;;  %v312_v29 = vadd.f32 %v311_v20, %v308_v13  ;;  %s1071_s27 = sld [smem:[#allocation7 + $0x3]]  ;;  %s1076_s5 = sld [smem:[#allocation6 + $0x209]] }
  0x78   :  { %v256_v28 = vadd.f32 %v255_v2, %v252_v18  ;;  %v319_v30 = vmul.f32 %v318_v22, %v879_v17  ;;  %v326_v32 = vstv %s951_s28  ;;  %v304_v34 = vstv %s949_s6  ;;  %s1080_s28 = sld [smem:[#allocation9 + $0x80]]  ;;  %s1082_s6 = sld [smem:[#allocation9 + $0x81]] }
  0x79   :  { %v286_v33 = vadd.f32 %v285_v7, %v282_v23  ;;  %v330_v36 = vstv %s956_s29  ;;  %v334_v37 = vstv %s958_s30  ;;  %v297_v40 = vmul.f32 %v296_v24, %v916_v38  ;;  %s1085_s29 = sld [smem:[#allocation9 + $0x2]] }
  0x7a   :  { %v301_v41 = vmul.f32 %v300_v25, %v918_v39  ;;  %v316_v42 = vadd.f32 %v315_v21, %v312_v29  ;;  %v323_v43 = vmul.f32 %v322_v26, %v885_v19  ;;  %v260_v44 = vadd.f32 %v259_v4, %v256_v28  ;;  %s1090_s30 = sld [smem:[#allocation9 + $0x82]] }
  0x7b   :  { %v290_v45 = vadd.f32 %v289_v9, %v286_v33  ;;  %v327_v46 = vmul.f32 %v326_v32, %v897_v27  ;;  %v338_v47 = vstv %s966_s8  ;;  %v331_v49 = vmul.f32 %v330_v36, %v906_v31  ;;  %s1095_s8 = sld [smem:[#allocation7 + $0x4]] }
  0x7c   :  { %v320_v48 = vadd.f32 %v319_v30, %v316_v42  ;;  %v335_v50 = vmul.f32 %v334_v37, %v912_v35  ;;  %v349_v51 = vstv %s971_s9  ;;  %v352_v54 = vstv %s976_s2  ;;  %s1101_s9 = sld [smem:[#allocation9 + $0x3]] }
  0x7d   :  { %v294_v52 = vadd.f32 %v293_v10, %v290_v45  ;;  %v350_v53 = vmul.f32 %v349_v51, %v865_v1  ;;  %v356_v55 = vstv %s978_s4  ;;  %v353_v57 = vmul.f32 %v352_v54, %v867_v12  ;;  %s1103_s2 = sld [smem:[#allocation9 + $0x83]]  ;;  %s583_s4 = sld [smem:[#allocation9 + $0x4]] }
  0x7e   :  { %v324_v56 = vadd.f32 %v323_v43, %v320_v48  ;;  %v357_v58 = vmul.f32 %v356_v55, %v877_v16  ;;  %v360_v59 = vstv %s983_s10  ;;  %v339_v61 = vmul.f32 %v338_v47, %v916_v38  ;;  %s588_s10 = sld [smem:[#allocation9 + $0x84]] }
  0x7f   :  { %v298_v60 = vadd.f32 %v297_v40, %v294_v52  ;;  %v342_v62 = vstv %s988_s11  ;;  %v364_v63 = vstv %s990_s12  ;;  %v354_v4 = vadd.f32 %v353_v57, %v350_v53  ;;  %s461_s11 = sld [smem:[#allocation10]]  ;;  %s589_s12 = sld [smem:[#allocation10 + $0x1]] }
  0x80   :  { %v328_v2 = vadd.f32 %v327_v46, %v324_v56  ;;  %v361_v5 = vmul.f32 %v360_v59, %v879_v17  ;;  %v368_v6 = vstv %s996_s14  ;;  %v263_v7 = vadd.f32 %v262_v3, %v260_v44 }
  0x81   :  { %v346_v8 = vstv %s994_s13  ;;  %v372_v9 = vstv %s1001_s15  ;;  %v376_v10 = vstv %s1003_s16  ;;  %v343_v0 = vmul.f32 %v342_v62, %v918_v39 }
  0x82   :  { %v332_v11 = vadd.f32 %v331_v49, %v328_v2  ;;  %v358_v13 = vadd.f32 %v357_v58, %v354_v4  ;;  %v365_v14 = vmul.f32 %v364_v63, %v885_v19  ;;  %v302_v15 = vadd.f32 %v301_v41, %v298_v60 }
  0x83   :  { %v369_v18 = vmul.f32 %v368_v6, %v897_v27  ;;  %v373_v3 = vmul.f32 %v372_v9, %v906_v31  ;;  %v380_v20 = vstv %s1010_s17  ;;  %v377_v23 = vmul.f32 %v376_v10, %v912_v35 }
  0x84   :  { %v336_v21 = vadd.f32 %v335_v50, %v332_v11  ;;  %v362_v22 = vadd.f32 %v361_v5, %v358_v13  ;;  %v391_v24 = vstv %s1015_s18  ;;  %v394_v26 = vstv %s1017_s19 }
  0x85   :  { %v392_v25 = vmul.f32 %v391_v24, %v865_v1  ;;  %v398_v28 = vstv %s1022_s0  ;;  %v402_v29 = vstv %s1024_s1  ;;  %v395_v33 = vmul.f32 %v394_v26, %v867_v12 }
  0x86   :  { %v340_v30 = vadd.f32 %v339_v61, %v336_v21  ;;  %v366_v32 = vadd.f32 %v365_v14, %v362_v22  ;;  %v399_v36 = vmul.f32 %v398_v28, %v877_v16  ;;  %v305_v37 = vadd.f32 %v304_v34, %v302_v15 }
  0x87   :  { %v384_v40 = vstv %s1032_s3  ;;  %v403_v1 = vmul.f32 %v402_v29, %v879_v17  ;;  %v406_v41 = vstv %s1034_s20  ;;  %v396_v44 = vadd.f32 %v395_v33, %v392_v25 }
  0x88   :  { %v344_v42 = vadd.f32 %v343_v0, %v340_v30  ;;  %v370_v43 = vadd.f32 %v369_v18, %v366_v32  ;;  %v410_v45 = vstv %s1038_s22  ;;  %v381_v12 = vmul.f32 %v380_v20, %v916_v38 }
  0x89   :  { %v414_v16 = vstv %s1045_s23  ;;  %v400_v17 = vadd.f32 %v399_v36, %v396_v44  ;;  %v407_v47 = vmul.f32 %v406_v41, %v885_v19  ;;  %v385_v48 = vmul.f32 %v384_v40, %v918_v39 }
  0x8a   :  { %v347_v34 = vadd.f32 %v346_v8, %v344_v42  ;;  %v374_v46 = vadd.f32 %v373_v3, %v370_v43  ;;  %v411_v49 = vmul.f32 %v410_v45, %v897_v27  ;;  %v418_v50 = vstv %s1052_s21 }
  0x8b   :  { %v432_v51 = vmul.f32 0.2, %v263_v7  ;;  %v404_v53 = vadd.f32 %v403_v1, %v400_v17  ;;  %v422_v54 = vstv %s1056_s24  ;;  %v434_v55 = vmul.f32 0.2, %v305_v37 }
  0x8c   :  { %v378_v52 = vadd.f32 %v377_v23, %v374_v46  ;;  %v415_v56 = vmul.f32 %v414_v16, %v906_v31  ;;  %v436_v57 = vmul.f32 0.2, %v347_v34  ;;  %v443_v58 = vstv %s1062_s25 }
  0x8d   :  { %v433_v19 = vmax.f32 %v263_v7, %v432_v51  ;;  %v408_v60 = vadd.f32 %v407_v47, %v404_v53  ;;  %v435_v27 = vmax.f32 %v305_v37, %v434_v55  ;;  %v446_v61 = vstv %s1066_s26 }
  0x8e   :  { %v382_v59 = vadd.f32 %v381_v12, %v378_v52  ;;  %v388_v62 = vstv %s1071_s27  ;;  %v419_v63 = vmul.f32 %v418_v50, %v912_v35  ;;  %v423_v2 = vmul.f32 %v422_v54, %v916_v38 }
  0x8f   :  { %v412_v4 = vadd.f32 %v411_v49, %v408_v60  ;;  %v426_v5 = vstv %s1076_s5  ;;  %v437_v6 = vmax.f32 %v347_v34, %v436_v57  ;;  %v444_v7 = vmul.f32 %v443_v58, %v433_v19 }
  0x90   :  { %v386_v31 = vadd.f32 %v385_v48, %v382_v59  ;;  %v447_v8 = vmul.f32 %v446_v61, %v435_v27  ;;  %v465_v9 = vstv %s1080_s28  ;;  %v468_v10 = vstv %s1082_s6 }
  0x91   :  { %v416_v0 = vadd.f32 %v415_v56, %v412_v4  ;;  %v450_v13 = vstv %s1085_s29  ;;  %v466_v35 = vmul.f32 %v465_v9, %v433_v19  ;;  %v469_v38 = vmul.f32 %v468_v10, %v435_v27 }
  0x92   :  { %v389_v11 = vadd.f32 %v388_v62, %v386_v31  ;;  %v472_v14 = vstv %s1090_s30  ;;  %v427_v18 = vmul.f32 %v426_v5, %v918_v39  ;;  %v448_v20 = vadd.f32 %v447_v8, %v444_v7 }
  0x93   :  { %v420_v15 = vadd.f32 %v419_v63, %v416_v0  ;;  %v451_v21 = vmul.f32 %v450_v13, %v437_v6  ;;  %v470_v24 = vadd.f32 %v469_v38, %v466_v35  ;;  %v473_v25 = vmul.f32 %v472_v14, %v437_v6 }
  0x94   :  { %v438_v3 = vmul.f32 0.2, %v389_v11  ;;  %v430_v26 = vstv %s1095_s8  ;;  %v454_v28 = vstv %s1101_s9  ;;  %v476_v29 = vstv %s1103_s2 }
  0x95   :  { %v424_v22 = vadd.f32 %v423_v2, %v420_v15  ;;  %v452_v32 = vadd.f32 %v451_v21, %v448_v20  ;;  %v474_v37 = vadd.f32 %v473_v25, %v470_v24  ;;  %v458_v1 = vstv %s583_s4 }
  0x96   :  { %v439_v23 = vmax.f32 %v389_v11, %v438_v3  ;;  %v480_v41 = vstv %s588_s10  ;;  %v462_v16 = vstv %s461_s11  ;;  %v484_v34 = vstv %s589_s12 }
  0x97   :  { %v428_v30 = vadd.f32 %v427_v18, %v424_v22 }
  0x98   :  { %v455_v36 = vmul.f32 %v454_v28, %v439_v23  ;;  %v477_v39 = vmul.f32 %v476_v29, %v439_v23 }
  0x99   :  { %v431_v33 = vadd.f32 %v430_v26, %v428_v30 }
  0x9a   :  { %v456_v43 = vadd.f32 %v455_v36, %v452_v32  ;;  %v478_v44 = vadd.f32 %v477_v39, %v474_v37 }
  0x9b   :  { %v440_v40 = vmul.f32 0.2, %v431_v33 }
  0x9d   :  { %v441_v42 = vmax.f32 %v431_v33, %v440_v40 }
  0x9f   :  { %v459_v45 = vmul.f32 %v458_v1, %v441_v42  ;;  %v481_v12 = vmul.f32 %v480_v41, %v441_v42 }
  0xa1   :  { %v460_v46 = vadd.f32 %v459_v45, %v456_v43  ;;  %v482_v17 = vadd.f32 %v481_v12, %v478_v44 }
  0xa3   :  { %v463_v47 = vadd.f32 %v462_v16, %v460_v46  ;;  %v485_v48 = vadd.f32 %v484_v34, %v482_v17 }
  0xa5   :  { %487 = vst.msk [vmem:[%s1127_s7] sm:$0xff] %vm486_vm0, %v463_v47  ;;  %590 = vst.msk [vmem:[%s1127_s7 + $0x8] sm:$0xff] %vm486_vm0, %v485_v48 }
  0xa6   :  { %494 = vsyncpa [#allocation3], 1 }
  0xa7   :  { %495 = vsyncpa [#allocation5], 1 }
  0xa8   :  { %496 = vsyncpa [#allocation8], 1 }
  0xa9   :  { %497 = vsyncpa [#allocation11], 1 }

</bundles_post_ra>
